<compile_context>
chip_gen: v7x
topology: tpu7x:2x2x1
jax: 0.10.0
libtpu: 0.0.40
codegen_flags: <defaults>
</compile_context>

<pallas_src>
import jax
import jax.numpy as jnp
from jax.experimental import pallas as pl
from jax.experimental.pallas import tpu as pltpu


def _hbm_copy_kernel(x_ref, o_ref, sem):
    # One whole-array HBM->HBM DMA.  No compute, no rank change in-kernel.
    cp = pltpu.make_async_copy(x_ref, o_ref, sem)
    cp.start()
    cp.wait()


def _unsqueeze_out_shape(shape, ndim, dim):
    ndim_out = ndim + 1
    if dim < 0:
        dim += ndim_out
    if not (0 <= dim < ndim_out):
        raise ValueError(f"dim={dim} out of range for output rank {ndim_out}")
    return shape[:dim] + (1,) + shape[dim:]


def unsqueeze(x, dim, *, force_kernel=False):
    """Pallas equivalent of torch.Tensor.unsqueeze(dim).

    Default path is the zero-copy `jnp.expand_dims` (metadata-only).
    `force_kernel=True` routes through an explicit Pallas HBM->HBM DMA copy.
    """
    out_shape = _unsqueeze_out_shape(x.shape, x.ndim, dim)

    if not force_kernel or x.ndim == 0 or x.size == 0:
        # Zero-copy production path: pure metadata rank change.
        return jnp.expand_dims(x, dim)

    # Explicit-kernel form: single whole-array HBM->HBM DMA (pl.ANY refs).
    y = pl.pallas_call(
        _hbm_copy_kernel,
        out_shape=jax.ShapeDtypeStruct(x.shape, x.dtype),
        in_specs=[pl.BlockSpec(memory_space=pl.ANY)],
        out_specs=pl.BlockSpec(memory_space=pl.ANY),
        scratch_shapes=[pltpu.SemaphoreType.DMA(())],
    )(x)

    # Rank change is pure metadata on the wrapper side (size-1 insert only,
    # so the minor tiled dims are untouched -> no relayout copy).
    return y.reshape(out_shape)


if __name__ == "__main__":
    # `Unsqueeze` has no parameters; only the `dim` hyperparameter from __init__.
    key = jax.random.PRNGKey(0)
    x = jax.random.normal(key, (2, 4, 16, 16), dtype=jnp.float32)

    # --- default zero-copy path ---------------------------------------------
    y = jax.block_until_ready(unsqueeze(x, 1))
    assert y.shape == (2, 1, 4, 16, 16), y.shape
    assert y.dtype == x.dtype, y.dtype
    assert jnp.array_equal(y, jnp.expand_dims(x, 1)), "mismatch vs reference (dim=1)"

    y_neg = jax.block_until_ready(unsqueeze(x, -1))
    assert y_neg.shape == (2, 4, 16, 16, 1), y_neg.shape
    assert jnp.array_equal(y_neg, jnp.expand_dims(x, -1)), "mismatch (dim=-1)"

    # --- explicit Pallas-kernel path (HBM->HBM DMA) --------------------------
    yk = jax.block_until_ready(unsqueeze(x, 1, force_kernel=True))
    assert yk.shape == (2, 1, 4, 16, 16), yk.shape
    assert yk.dtype == x.dtype, yk.dtype
    assert jnp.array_equal(yk, jnp.expand_dims(x, 1)), "kernel mismatch (dim=1)"

    yk_neg = jax.block_until_ready(unsqueeze(x, -1, force_kernel=True))
    assert yk_neg.shape == (2, 4, 16, 16, 1), yk_neg.shape
    assert jnp.array_equal(yk_neg, jnp.expand_dims(x, -1)), "kernel mismatch (dim=-1)"

    yk0 = jax.block_until_ready(unsqueeze(x, 0, force_kernel=True))
    assert yk0.shape == (1, 2, 4, 16, 16), yk0.shape
    assert jnp.array_equal(yk0, jnp.expand_dims(x, 0)), "kernel mismatch (dim=0)"

    print("KERNEL_OK")
</pallas_src>

<mosaic_0001>
module attributes {stable_mosaic.version = 11 : i64} {
  func.func @_hbm_copy_kernel(%arg0: memref<2x4x16x16xf32, #tpu.memory_space<any>>, %arg1: memref<2x4x16x16xf32, #tpu.memory_space<any>>, %arg2: memref<!tpu.dma_semaphore, #tpu.memory_space<semaphore_mem>>) attributes {dimension_semantics = [], scalar_prefetch = 0 : i64, scratch_operands = 1 : i64, tpu.core_type = #tpu.core_type<tc>} {
    tpu.enqueue_dma source(%arg0 : memref<2x4x16x16xf32, #tpu.memory_space<any>>) target(%arg1 : memref<2x4x16x16xf32, #tpu.memory_space<any>>) target_semaphore(%arg2 : memref<!tpu.dma_semaphore, #tpu.memory_space<semaphore_mem>>)
    tpu.wait_dma2 semaphore(%arg2 : memref<!tpu.dma_semaphore, #tpu.memory_space<semaphore_mem>>) src(%arg0 : memref<2x4x16x16xf32, #tpu.memory_space<any>>) dst(%arg1 : memref<2x4x16x16xf32, #tpu.memory_space<any>>)
    return
  }
}

</mosaic_0001>

<bundles_post_ra>
// kernel: tpu_custom_call.1
= control target key start
LH: loop header
LB: loop body
LE: loop exit
PB: predicated region body
PF: predicated region fallthrough
CT: control target
= control target key end

     0   :  { %s36_s6 = smov [#allocation2]   ;;  %s37_s7 = smov [#allocation3]   ;;  %s55_s0 = inlined_call_operand.hbm [shape: f32[2,4,16,16], index: 0, kind: input, shape index: {}]   ;;  %s56_s1 = inlined_call_operand.hbm [shape: f32[2,4,16,16], index: 1, kind: output, shape index: {}]  }
   0x1   :  { %s38_s8 = smov 0  }
   0x2   :  { %18 = dma.general %s55_s0, 2048, %s56_s1, %s36_s6, %s37_s7, [#allocation4], %s38_s8, 0  }
   0x3   :  { %34 = dma.done.wait [#allocation2], 2048 }
   0x4   :  { %35 = vsyncadd [#allocation2], 4294965248 }
   0x5   :  { %24 = vsyncmov [#allocation2] }
   0x8   :  { %s25_s13 = vpop.sfrf %24 }
   0x9   :  { %p30_p0 = scmp.ne.s32.totalorder %s25_s13, 0 }
   0xb   :  { %29 = shalt.err (%p30_p0)  }

</bundles_post_ra>
